<compile_context>
chip_gen: v5e
topology: v5e:2x2
jax: 0.10.0
libtpu: 0.0.40
codegen_flags: <defaults>
</compile_context>

<pallas_src>
import jax
import jax.numpy as jnp
import numpy as np
from jax.experimental import pallas as pl
from jax.experimental.pallas import tpu as pltpu


def _round_up(x, m):
    return -(-x // m) * m


def _is_multi_tensorcore_chip():
    # v7x has 2 TensorCores per chip; v5e / v6e have 1.  Unknown -> single.
    try:
        kind = jax.devices()[0].device_kind.lower()
        return "v7" in kind
    except Exception:
        return False


def make_param_transform_unet(grid_dim, grid_low, grid_high):
    """Returns forward(coord_v) implementing ParameterTransformUNet.forward."""
    G0, G1, G2 = (int(g) for g in grid_dim)
    GFLAT = G0 * G1 * G2
    low = tuple(float(v) for v in grid_low)
    high = tuple(float(v) for v in grid_high)
    # Fold the constant divides into reciprocal multiplies at trace time.
    recip = tuple((1.0 / (h - l)) if h != l else float("inf")
                  for l, h in zip(low, high))

    def _make_kernel(tb, S):
        def kernel(c_ref, out_ref):
            c = c_ref[0]                      # (tb, 3*S): [x | y | z] on lanes
            x = c[:, 0:S]
            y = c[:, S:2 * S]
            zc = c[:, 2 * S:3 * S]

            # v_to_grid: per-column affine map to [0, 1] + nan_to_num.
            xg = jnp.nan_to_num((x - low[0]) * recip[0])
            yg = jnp.nan_to_num((y - low[1]) * recip[1])
            zg = jnp.nan_to_num((zc - low[2]) * recip[2])

            # floor(coord_grid * grid_dim) with per-column grid dims.
            i0 = jnp.floor(xg * float(G0)).astype(jnp.int32)  # x -> z dim 1
            iy = jnp.floor(yg * float(G1)).astype(jnp.int32)  # y (pre-swap)
            iz = jnp.floor(zg * float(G2)).astype(jnp.int32)  # z (pre-swap)

            # Row swap: z dim-1 <- z index, z dim-2 <- y index; negative
            # indices wrap once (torch negative advanced indexing).
            i1 = jnp.where(iz < 0, iz + G1, iz)
            i2 = jnp.where(iy < 0, iy + G2, iy)

            # Only points with i0 >= 0 (and in-range) are kept.
            # TODO(synk): the torch module's data-dependent assert
            # (amax(idx) <= grid_dim) is not reproduced; out-of-range points
            # are silently dropped instead of raising.
            valid = ((i0 >= 0) & (i0 < G0) & (i1 >= 0) & (i1 < G1)
                     & (i2 >= 0) & (i2 < G2))                    # (tb, S)
            # No clips needed: invalid points are forced to -1 (never matches).
            iflat = jnp.where(valid, (i0 * G1 + i1) * G2 + i2, -1)

            # Boolean OR accumulation over the S points (VPU compare + OR);
            # one bool->f32 convert at the very end.
            # (For much larger S, switch to a fused 3-D compare+reduce or a
            # lax.fori_loop(unroll=True) to bound code size / live ranges.)
            iota = jax.lax.broadcasted_iota(jnp.int32, (tb, GFLAT), 1)
            acc = iflat[:, 0:1] == iota
            for s in range(1, S):                 # S is small (static)
                acc = acc | (iflat[:, s:s + 1] == iota)
            out_ref[0] = acc.astype(jnp.float32)  # lane-dense (tb, GFLAT) store

        return kernel

    def forward(coord_v):
        coord_v = jnp.asarray(coord_v, jnp.float32)
        B, S, _ = coord_v.shape
        if B == 0 or S == 0:
            return jnp.zeros((B, G0, G1, G2), jnp.float32)

        # ---- batch tiling -------------------------------------------------
        # Output blocks are (tb, GFLAT): keep tb a multiple of 8 (full (8,128)
        # tiles, unmasked stores) and minimize grid steps (each step costs
        # ~0.35 us).  tb is capped by a conservative VMEM budget (safe on
        # v7x's smaller VMEM) and at 256.
        B8 = max(8, _round_up(B, 8))
        vmem_budget = 16 * 1024 * 1024            # output double-buffer budget
        tb_vmem = max(8, (vmem_budget // (2 * GFLAT * 4)) // 8 * 8)
        tb_cap = min(256, tb_vmem)
        tb = min(B8, tb_cap)
        n_steps = -(-B8 // tb)
        # Megacore split only on multi-TC chips (v7x) and only when each core
        # gets >= 8 full batch rows; single-TC chips always take the min-step
        # path (grid is a serial loop there).
        if _is_multi_tensorcore_chip() and n_steps == 1 and B8 >= 16:
            n_steps = 2
            tb = _round_up(-(-B8 // 2), 8)
        B_pad = n_steps * tb

        # Layout plumbing: pack xyz on the lane axis -> one DMA per step.
        coords = jnp.transpose(coord_v, (0, 2, 1)).reshape(B, 3 * S)
        if B_pad != B:
            # Padded rows only write into padded output rows, sliced off below.
            coords = jnp.pad(coords, ((0, B_pad - B), (0, 0)))
        coords = coords.reshape(n_steps, tb, 3 * S)

        cost = pl.CostEstimate(
            flops=B_pad * S * GFLAT + 32 * B_pad * S,
            transcendentals=0,
            bytes_accessed=B_pad * 3 * S * 4 + B_pad * GFLAT * 4,
        )

        z_flat = pl.pallas_call(
            _make_kernel(tb, S),
            out_shape=jax.ShapeDtypeStruct((n_steps, tb, GFLAT), jnp.float32),
            grid=(n_steps,),
            in_specs=[pl.BlockSpec((1, tb, 3 * S), lambda i: (i, 0, 0))],
            out_specs=pl.BlockSpec((1, tb, GFLAT), lambda i: (i, 0, 0)),
            compiler_params=pltpu.CompilerParams(
                dimension_semantics=("parallel",)),
            cost_estimate=cost,
        )(coords)

        z_flat = z_flat.reshape(B_pad, GFLAT)[:B]
        return z_flat.reshape(B, G0, G1, G2)

    return forward


def reference_forward(coord_v, grid_dim, grid_low, grid_high):
    """Pure-JAX reference mirroring the torch scatter semantics."""
    G0, G1, G2 = (int(g) for g in grid_dim)
    low = jnp.asarray(grid_low, jnp.float32)
    recip = jnp.asarray(
        [(1.0 / (h - l)) if h != l else float("inf")
         for l, h in zip(grid_low, grid_high)], jnp.float32)
    gd = jnp.asarray([G0, G1, G2], jnp.float32)

    cg = jnp.nan_to_num((coord_v - low) * recip)
    idx = jnp.floor(cg * gd).astype(jnp.int32)           # (B,S,3)
    ix, iy, iz = idx[..., 0], idx[..., 1], idx[..., 2]
    i1 = jnp.where(iz < 0, iz + G1, iz)
    i2 = jnp.where(iy < 0, iy + G2, iy)
    val = ((ix >= 0) & (ix < G0) & (i1 >= 0) & (i1 < G1)
           & (i2 >= 0) & (i2 < G2)).astype(jnp.float32)
    B, S = ix.shape
    b = jnp.broadcast_to(jnp.arange(B)[:, None], (B, S))
    z = jnp.zeros((B, G0, G1, G2), jnp.float32)
    z = z.at[b,
             jnp.clip(ix, 0, G0 - 1),
             jnp.clip(i1, 0, G1 - 1),
             jnp.clip(i2, 0, G2 - 1)].max(val)
    return z


if __name__ == "__main__":
    # Deterministic module "parameters" (constructor args of the torch module).
    grid_dim = (8, 8, 8)
    grid_low = (-1.0, -1.0, -1.0)
    grid_high = (1.0, 1.0, 1.0)

    B, S = 2, 8  # n_batch, n_sub_var
    key = jax.random.PRNGKey(0)
    coord_v = jax.random.uniform(key, (B, S, 3), jnp.float32,
                                 minval=-1.0, maxval=0.999)
    # Exercise the "indices[1] >= 0" filter and the negative-index wrap paths.
    coord_v = coord_v.at[0, 0, 0].set(-1.5)   # ix < 0 -> point dropped
    coord_v = coord_v.at[1, 1, 1].set(-1.3)   # iy < 0 -> wraps on z's dim 2

    fwd = make_param_transform_unet(grid_dim, grid_low, grid_high)
    z = jax.block_until_ready(fwd(coord_v))

    z_ref = reference_forward(coord_v, grid_dim, grid_low, grid_high)
    np.testing.assert_allclose(np.asarray(z), np.asarray(z_ref), atol=0, rtol=0)
    assert z.shape == (B, *grid_dim) and z.dtype == jnp.float32

    print("KERNEL_OK")
</pallas_src>

<mosaic_0001>
module attributes {stable_mosaic.version = 11 : i64} {
  func.func @kernel(%arg0: i32, %arg1: memref<1x8x24xf32, #tpu.memory_space<vmem>>, %arg2: memref<1x8x512xf32, #tpu.memory_space<vmem>>) attributes {dimension_semantics = [#tpu.dimension_semantics<parallel>], iteration_bounds = array<i64: 1>, scalar_prefetch = 0 : i64, scratch_operands = 0 : i64, tpu.core_type = #tpu.core_type<tc>, window_params = [{transform_indices = @transform_0, window_bounds = array<i64: 1, 8, 24>}, {transform_indices = @transform_1, window_bounds = array<i64: 1, 8, 512>}]} {
    %c0 = arith.constant 0 : index
    %c0_0 = arith.constant 0 : index
    %c0_1 = arith.constant 0 : index
    %0 = vector.load %arg1[%c0, %c0_0, %c0_1] : memref<1x8x24xf32, #tpu.memory_space<vmem>>, vector<1x8x24xf32>
    %1 = vector.shape_cast %0 : vector<1x8x24xf32> to vector<8x24xf32>
    %2 = vector.extract_strided_slice %1 {offsets = [0, 0], sizes = [8, 8], strides = [1, 1]} : vector<8x24xf32> to vector<8x8xf32>
    %3 = vector.extract_strided_slice %1 {offsets = [0, 8], sizes = [8, 8], strides = [1, 1]} : vector<8x24xf32> to vector<8x8xf32>
    %4 = vector.extract_strided_slice %1 {offsets = [0, 16], sizes = [8, 8], strides = [1, 1]} : vector<8x24xf32> to vector<8x8xf32>
    %cst = arith.constant -1.000000e+00 : f32
    %5 = vector.broadcast %cst : f32 to vector<8x8xf32>
    %6 = arith.subf %2, %5 : vector<8x8xf32>
    %cst_2 = arith.constant 5.000000e-01 : f32
    %7 = vector.broadcast %cst_2 : f32 to vector<8x8xf32>
    %8 = arith.mulf %6, %7 : vector<8x8xf32>
    %9 = arith.cmpf one, %8, %8 : vector<8x8xf32>
    %cst_3 = arith.constant 0.000000e+00 : f32
    %10 = vector.broadcast %cst_3 : f32 to vector<8x8xf32>
    %11 = arith.select %9, %10, %8 : vector<8x8xi1>, vector<8x8xf32>
    %cst_4 = arith.constant 0x7F800000 : f32
    %12 = vector.broadcast %cst_4 : f32 to vector<8x8xf32>
    %13 = arith.cmpf oeq, %11, %12 : vector<8x8xf32>
    %cst_5 = arith.constant 3.40282347E+38 : f32
    %14 = vector.broadcast %cst_5 : f32 to vector<8x8xf32>
    %15 = arith.select %13, %14, %11 : vector<8x8xi1>, vector<8x8xf32>
    %cst_6 = arith.constant 0xFF800000 : f32
    %16 = vector.broadcast %cst_6 : f32 to vector<8x8xf32>
    %17 = arith.cmpf oeq, %15, %16 : vector<8x8xf32>
    %cst_7 = arith.constant -3.40282347E+38 : f32
    %18 = vector.broadcast %cst_7 : f32 to vector<8x8xf32>
    %19 = arith.select %17, %18, %15 : vector<8x8xi1>, vector<8x8xf32>
    %cst_8 = arith.constant -1.000000e+00 : f32
    %20 = vector.broadcast %cst_8 : f32 to vector<8x8xf32>
    %21 = arith.subf %3, %20 : vector<8x8xf32>
    %cst_9 = arith.constant 5.000000e-01 : f32
    %22 = vector.broadcast %cst_9 : f32 to vector<8x8xf32>
    %23 = arith.mulf %21, %22 : vector<8x8xf32>
    %24 = arith.cmpf one, %23, %23 : vector<8x8xf32>
    %cst_10 = arith.constant 0.000000e+00 : f32
    %25 = vector.broadcast %cst_10 : f32 to vector<8x8xf32>
    %26 = arith.select %24, %25, %23 : vector<8x8xi1>, vector<8x8xf32>
    %cst_11 = arith.constant 0x7F800000 : f32
    %27 = vector.broadcast %cst_11 : f32 to vector<8x8xf32>
    %28 = arith.cmpf oeq, %26, %27 : vector<8x8xf32>
    %cst_12 = arith.constant 3.40282347E+38 : f32
    %29 = vector.broadcast %cst_12 : f32 to vector<8x8xf32>
    %30 = arith.select %28, %29, %26 : vector<8x8xi1>, vector<8x8xf32>
    %cst_13 = arith.constant 0xFF800000 : f32
    %31 = vector.broadcast %cst_13 : f32 to vector<8x8xf32>
    %32 = arith.cmpf oeq, %30, %31 : vector<8x8xf32>
    %cst_14 = arith.constant -3.40282347E+38 : f32
    %33 = vector.broadcast %cst_14 : f32 to vector<8x8xf32>
    %34 = arith.select %32, %33, %30 : vector<8x8xi1>, vector<8x8xf32>
    %cst_15 = arith.constant -1.000000e+00 : f32
    %35 = vector.broadcast %cst_15 : f32 to vector<8x8xf32>
    %36 = arith.subf %4, %35 : vector<8x8xf32>
    %cst_16 = arith.constant 5.000000e-01 : f32
    %37 = vector.broadcast %cst_16 : f32 to vector<8x8xf32>
    %38 = arith.mulf %36, %37 : vector<8x8xf32>
    %39 = arith.cmpf one, %38, %38 : vector<8x8xf32>
    %cst_17 = arith.constant 0.000000e+00 : f32
    %40 = vector.broadcast %cst_17 : f32 to vector<8x8xf32>
    %41 = arith.select %39, %40, %38 : vector<8x8xi1>, vector<8x8xf32>
    %cst_18 = arith.constant 0x7F800000 : f32
    %42 = vector.broadcast %cst_18 : f32 to vector<8x8xf32>
    %43 = arith.cmpf oeq, %41, %42 : vector<8x8xf32>
    %cst_19 = arith.constant 3.40282347E+38 : f32
    %44 = vector.broadcast %cst_19 : f32 to vector<8x8xf32>
    %45 = arith.select %43, %44, %41 : vector<8x8xi1>, vector<8x8xf32>
    %cst_20 = arith.constant 0xFF800000 : f32
    %46 = vector.broadcast %cst_20 : f32 to vector<8x8xf32>
    %47 = arith.cmpf oeq, %45, %46 : vector<8x8xf32>
    %cst_21 = arith.constant -3.40282347E+38 : f32
    %48 = vector.broadcast %cst_21 : f32 to vector<8x8xf32>
    %49 = arith.select %47, %48, %45 : vector<8x8xi1>, vector<8x8xf32>
    %cst_22 = arith.constant 8.000000e+00 : f32
    %50 = vector.broadcast %cst_22 : f32 to vector<8x8xf32>
    %51 = arith.mulf %19, %50 : vector<8x8xf32>
    %52 = math.floor %51 : vector<8x8xf32>
    %53 = arith.fptosi %52 : vector<8x8xf32> to vector<8x8xi32>
    %cst_23 = arith.constant 8.000000e+00 : f32
    %54 = vector.broadcast %cst_23 : f32 to vector<8x8xf32>
    %55 = arith.mulf %34, %54 : vector<8x8xf32>
    %56 = math.floor %55 : vector<8x8xf32>
    %57 = arith.fptosi %56 : vector<8x8xf32> to vector<8x8xi32>
    %cst_24 = arith.constant 8.000000e+00 : f32
    %58 = vector.broadcast %cst_24 : f32 to vector<8x8xf32>
    %59 = arith.mulf %49, %58 : vector<8x8xf32>
    %60 = math.floor %59 : vector<8x8xf32>
    %61 = arith.fptosi %60 : vector<8x8xf32> to vector<8x8xi32>
    %c0_i32 = arith.constant 0 : i32
    %62 = vector.broadcast %c0_i32 : i32 to vector<8x8xi32>
    %63 = arith.cmpi slt, %61, %62 : vector<8x8xi32>
    %c8_i32 = arith.constant 8 : i32
    %64 = vector.broadcast %c8_i32 : i32 to vector<8x8xi32>
    %65 = arith.addi %61, %64 : vector<8x8xi32>
    %66 = arith.select %63, %65, %61 : vector<8x8xi1>, vector<8x8xi32>
    %c0_i32_25 = arith.constant 0 : i32
    %67 = vector.broadcast %c0_i32_25 : i32 to vector<8x8xi32>
    %68 = arith.cmpi slt, %57, %67 : vector<8x8xi32>
    %c8_i32_26 = arith.constant 8 : i32
    %69 = vector.broadcast %c8_i32_26 : i32 to vector<8x8xi32>
    %70 = arith.addi %57, %69 : vector<8x8xi32>
    %71 = arith.select %68, %70, %57 : vector<8x8xi1>, vector<8x8xi32>
    %c0_i32_27 = arith.constant 0 : i32
    %72 = vector.broadcast %c0_i32_27 : i32 to vector<8x8xi32>
    %73 = arith.cmpi sge, %53, %72 : vector<8x8xi32>
    %c8_i32_28 = arith.constant 8 : i32
    %74 = vector.broadcast %c8_i32_28 : i32 to vector<8x8xi32>
    %75 = arith.cmpi slt, %53, %74 : vector<8x8xi32>
    %76 = arith.andi %73, %75 : vector<8x8xi1>
    %c0_i32_29 = arith.constant 0 : i32
    %77 = vector.broadcast %c0_i32_29 : i32 to vector<8x8xi32>
    %78 = arith.cmpi sge, %66, %77 : vector<8x8xi32>
    %79 = arith.andi %76, %78 : vector<8x8xi1>
    %c8_i32_30 = arith.constant 8 : i32
    %80 = vector.broadcast %c8_i32_30 : i32 to vector<8x8xi32>
    %81 = arith.cmpi slt, %66, %80 : vector<8x8xi32>
    %82 = arith.andi %79, %81 : vector<8x8xi1>
    %c0_i32_31 = arith.constant 0 : i32
    %83 = vector.broadcast %c0_i32_31 : i32 to vector<8x8xi32>
    %84 = arith.cmpi sge, %71, %83 : vector<8x8xi32>
    %85 = arith.andi %82, %84 : vector<8x8xi1>
    %c8_i32_32 = arith.constant 8 : i32
    %86 = vector.broadcast %c8_i32_32 : i32 to vector<8x8xi32>
    %87 = arith.cmpi slt, %71, %86 : vector<8x8xi32>
    %88 = arith.andi %85, %87 : vector<8x8xi1>
    %c8_i32_33 = arith.constant 8 : i32
    %89 = vector.broadcast %c8_i32_33 : i32 to vector<8x8xi32>
    %90 = arith.muli %53, %89 : vector<8x8xi32>
    %91 = arith.addi %90, %66 : vector<8x8xi32>
    %c8_i32_34 = arith.constant 8 : i32
    %92 = vector.broadcast %c8_i32_34 : i32 to vector<8x8xi32>
    %93 = arith.muli %91, %92 : vector<8x8xi32>
    %94 = arith.addi %93, %71 : vector<8x8xi32>
    %c-1_i32 = arith.constant -1 : i32
    %95 = vector.broadcast %c-1_i32 : i32 to vector<8x8xi32>
    %96 = arith.select %88, %94, %95 : vector<8x8xi1>, vector<8x8xi32>
    %97 = tpu.iota {dimensions = array<i32: 1>} : vector<8x512xi32>
    %98 = vector.extract_strided_slice %96 {offsets = [0, 0], sizes = [8, 1], strides = [1, 1]} : vector<8x8xi32> to vector<8x1xi32>
    %99 = vector.broadcast %98 : vector<8x1xi32> to vector<8x512xi32>
    %100 = arith.cmpi eq, %99, %97 : vector<8x512xi32>
    %101 = vector.extract_strided_slice %96 {offsets = [0, 1], sizes = [8, 1], strides = [1, 1]} : vector<8x8xi32> to vector<8x1xi32>
    %102 = vector.broadcast %101 : vector<8x1xi32> to vector<8x512xi32>
    %103 = arith.cmpi eq, %102, %97 : vector<8x512xi32>
    %104 = arith.ori %100, %103 : vector<8x512xi1>
    %105 = vector.extract_strided_slice %96 {offsets = [0, 2], sizes = [8, 1], strides = [1, 1]} : vector<8x8xi32> to vector<8x1xi32>
    %106 = vector.broadcast %105 : vector<8x1xi32> to vector<8x512xi32>
    %107 = arith.cmpi eq, %106, %97 : vector<8x512xi32>
    %108 = arith.ori %104, %107 : vector<8x512xi1>
    %109 = vector.extract_strided_slice %96 {offsets = [0, 3], sizes = [8, 1], strides = [1, 1]} : vector<8x8xi32> to vector<8x1xi32>
    %110 = vector.broadcast %109 : vector<8x1xi32> to vector<8x512xi32>
    %111 = arith.cmpi eq, %110, %97 : vector<8x512xi32>
    %112 = arith.ori %108, %111 : vector<8x512xi1>
    %113 = vector.extract_strided_slice %96 {offsets = [0, 4], sizes = [8, 1], strides = [1, 1]} : vector<8x8xi32> to vector<8x1xi32>
    %114 = vector.broadcast %113 : vector<8x1xi32> to vector<8x512xi32>
    %115 = arith.cmpi eq, %114, %97 : vector<8x512xi32>
    %116 = arith.ori %112, %115 : vector<8x512xi1>
    %117 = vector.extract_strided_slice %96 {offsets = [0, 5], sizes = [8, 1], strides = [1, 1]} : vector<8x8xi32> to vector<8x1xi32>
    %118 = vector.broadcast %117 : vector<8x1xi32> to vector<8x512xi32>
    %119 = arith.cmpi eq, %118, %97 : vector<8x512xi32>
    %120 = arith.ori %116, %119 : vector<8x512xi1>
    %121 = vector.extract_strided_slice %96 {offsets = [0, 6], sizes = [8, 1], strides = [1, 1]} : vector<8x8xi32> to vector<8x1xi32>
    %122 = vector.broadcast %121 : vector<8x1xi32> to vector<8x512xi32>
    %123 = arith.cmpi eq, %122, %97 : vector<8x512xi32>
    %124 = arith.ori %120, %123 : vector<8x512xi1>
    %125 = vector.extract_strided_slice %96 {offsets = [0, 7], sizes = [8, 1], strides = [1, 1]} : vector<8x8xi32> to vector<8x1xi32>
    %126 = vector.broadcast %125 : vector<8x1xi32> to vector<8x512xi32>
    %127 = arith.cmpi eq, %126, %97 : vector<8x512xi32>
    %128 = arith.ori %124, %127 : vector<8x512xi1>
    %129 = arith.extui %128 : vector<8x512xi1> to vector<8x512xi32>
    %130 = arith.sitofp %129 : vector<8x512xi32> to vector<8x512xf32>
    %c0_35 = arith.constant 0 : index
    %c0_36 = arith.constant 0 : index
    %c0_37 = arith.constant 0 : index
    %131 = vector.load %arg2[%c0_35, %c0_36, %c0_37] : memref<1x8x512xf32, #tpu.memory_space<vmem>>, vector<1x8x512xf32>
    %132 = vector.shape_cast %131 : vector<1x8x512xf32> to vector<8x512xf32>
    %133 = vector.shape_cast %130 : vector<8x512xf32> to vector<1x8x512xf32>
    tpu.vector_store %arg2[%c0_35, %c0_36, %c0_37], %133 {strides = array<i32>} : memref<1x8x512xf32, #tpu.memory_space<vmem>>, vector<1x8x512xf32>,
    return
  }
  func.func @transform_0(%arg0: i32) -> (i32, i32, i32) {
    %c0_i32 = arith.constant 0 : i32
    %c0_i32_0 = arith.constant 0 : i32
    %c0_i32_1 = arith.constant 0 : i32
    return %arg0, %c0_i32, %c0_i32_0 : i32, i32, i32
  }
  func.func @transform_1(%arg0: i32) -> (i32, i32, i32) {
    %c0_i32 = arith.constant 0 : i32
    %c0_i32_0 = arith.constant 0 : i32
    %c0_i32_1 = arith.constant 0 : i32
    return %arg0, %c0_i32, %c0_i32_0 : i32, i32, i32
  }
}

</mosaic_0001>

<bundles_post_ra>
// kernel: tpu_custom_call.1
= control target key start
LH: loop header
LB: loop body
LE: loop exit
PB: predicated region body
PF: predicated region fallthrough
CT: control target
= control target key end

     0   :  { %6 = vsyncpa [#allocation3], 0  ;;  %s341_s0 = inlined_call_operand.hbm [shape: f32[1,8,24], index: 0, kind: input, shape index: {}]   ;;  %s342_s1 = inlined_call_operand.hbm [shape: f32[1,8,512], index: 1, kind: output, shape index: {}]  }
   0x1   :  { %7 = vsyncpa [#allocation4], 0  ;;  %s13_s8 = sshll.u32 %s341_s0, 4  ;;  %s269_s9 = smov [#allocation2]   ;;  %s14_s8 = int_to_ptr.hbm [resolvable:$true] %s13_s8 }
   0x2   :  { %s15_s10 = sshll.u32 %s269_s9, 4  ;;  %s16_s10 = int_to_ptr.vmem [resolvable:$true] %s15_s10 }
   0x3   :  { %18 = dma.hbm_to_vmem [thread:$0]  %s14_s8, 128, %s16_s10, [#allocation3]  }
   0x4   :  { %265 = dma.done.wait [#allocation3], 128  }
   0x5   :  { %266 = vsyncadd [#allocation3], 4294967168  ;;  %v270_v0 = vmov 0   ;;  %v23_v1 = vld [vmem:[#allocation2] sm:$0xff]  ;;  %s271_s0 = smov 112   ;;  %s272_s11 = smov 120   ;;  %v70_v32 = vlaneseq }
   0x6   :  { %208 = vset.pattern.permute.xlu0 %v270_v0  ;;  %v188_v2 = vadd.f32 1.0, %v23_v1  ;;  %v273_v14 = vmov 2   ;;  %v274_v15 = vmov 1   ;;  %v275_v27 = vmov 4   ;;  %s280_s12 = smov [#allocation5]   ;;  %s178_s16 = sshll.u32 %s342_s1, 4  ;;  %s179_s16 = int_to_ptr.hbm [resolvable:$true] %s178_s16 }
   0x7   :  { %210 = vset.pattern.permute.xlu2 %v273_v14  ;;  %209 = vset.pattern.permute.xlu1 %v274_v15  ;;  %v276_v28 = vmov 3   ;;  %v277_v29 = vmov 5   ;;  %v278_v30 = vmov 7   ;;  %v279_v31 = vmov 6   ;;  %s176_s13 = sshll.u32 %s280_s12, 4  ;;  %s177_s13 = int_to_ptr.vmem [resolvable:$true] %s176_s13 }
   0x8   :  { %v25_v3 = vmul.f32 0.5, %v188_v2  ;;  %v295_v33 = vand.u32 127, %v70_v32  ;;  %v281_v45 = vmov 0.0  }
   0xa   :  { %vm26_vm0 = vcmp.ne.f32.partialorder %v25_v3, %v25_v3  ;;  %v298_v34 = vadd.s32 128, %v295_v33  ;;  %v301_v36 = vadd.s32 256, %v295_v33  ;;  %v305_v38 = vadd.s32 384, %v295_v33 }
   0xb   :  { %v27_v4 = vsel %vm26_vm0, 0.0, %v25_v3 }
   0xc   :  { %vm28_vm1 = vcmp.eq.f32.partialorder %v27_v4, inf }
   0xd   :  { %v29_v5 = vsel %vm28_vm1, 3.4028235e+38, %v27_v4 }
   0xe   :  { %vm30_vm2 = vcmp.eq.f32.partialorder %v29_v5, -inf }
   0xf   :  { %v31_v6 = vsel %vm30_vm2, -3.4028235e+38, %v29_v5 }
  0x10   :  { %v32_v7 = vmul.f32 8.0, %v31_v6 }
  0x12   :  { %v33_v8 = vfloor.f32 %v32_v7 }
  0x14   :  { %v194_v9 = vcvt.f32.s32 %v33_v8 }
  0x16   :  { %vm35_vm3 = vcmp.lt.s32.totalorder %v194_v9, 0  ;;  %v36_v10 = vadd.s32 8, %v194_v9  ;;  %v61_v17 = vmul.u32 8, %v194_v9  ;;  %vm38_vm6 = vcmp.ge.s32.totalorder %v194_v9, 0 }
  0x17   :  { %vm39_vm7 = vcmp.lt.s32.totalorder %v194_v9, 8 }
  0x18   :  { %v37_v11 = vsel %vm35_vm3, %v36_v10, %v194_v9  ;;  %vm40_vm8 = vmand %vm38_vm6, %vm39_vm7 }
  0x19   :  { %62 = vrot.lane.b32.xlu0 %v37_v11, %s271_s0  ;;  %vm47_vm4 = vcmp.lt.s32.totalorder %v37_v11, 8  ;;  %vm41_vm5 = vcmp.ge.s32.totalorder %v37_v11, 0 }
  0x1a   :  { %v48_v12 = vsel %vm47_vm4, 1, %v270_v0  ;;  %v42_v13 = vsel %vm41_vm5, 1, %v270_v0 }
  0x1b   :  { %49 = vrot.lane.b32.xlu1 %v48_v12, %s271_s0  ;;  %57 = vrot.lane.b32.xlu2 %v48_v12, %s272_s11 }
  0x21   :  { %43 = vrot.lane.b32.xlu0 %v42_v13, %s271_s0 }
  0x23   :  { %53 = vrot.lane.b32.xlu1 %v42_v13, %s272_s11  ;;  %66 = vrot.lane.b32.xlu2 %v37_v11, %s272_s11 }
  0x75   :  { %v58_v16 = vpop.permute.xlu2 %57 }
  0x76   :  { %vm59_vm14 = vcmp.ne.s32.totalorder %v58_v16, 0 }
  0x7d   :  { %v67_v23 = vpop.permute.xlu2 %66 }
  0x8b   :  { %v63_v18 = vpop.permute.xlu0 %62 }
  0x8c   :  { %v64_v20 = vadd.s32 %v63_v18, %v61_v17 }
  0x8d   :  { %v50_v19 = vpop.permute.xlu1 %49 }
  0x8e   :  { %v65_v21 = vmul.u32 8, %v64_v20  ;;  %vm51_vm10 = vcmp.ne.s32.totalorder %v50_v19, 0 }
  0x90   :  { %v68_v25 = vadd.s32 %v67_v23, %v65_v21 }
  0x93   :  { %v44_v22 = vpop.permute.xlu0 %43 }
  0x94   :  { %vm45_vm9 = vcmp.ne.s32.totalorder %v44_v22, 0 }
  0x95   :  { %vm46_vm11 = vmand %vm40_vm8, %vm45_vm9  ;;  %v54_v24 = vpop.permute.xlu1 %53 }
  0x96   :  { %vm52_vm12 = vmand %vm46_vm11, %vm51_vm10  ;;  %vm55_vm13 = vcmp.ne.s32.totalorder %v54_v24, 0 }
  0x97   :  { %vm56_vm15 = vmand %vm52_vm12, %vm55_vm13 }
  0x98   :  { %vm60_vm0 = vmand %vm56_vm15, %vm59_vm14 }
  0x99   :  { %v69_v26 = vsel %vm60_vm0, %v68_v25, 4294967295 }
  0x9a   :  { %94 = vperm.xlu2 %210, %v69_v26   ;;  %83 = vperm.xlu1 %209, %v69_v26  }
  0x9b   :  { %76 = vperm.xlu0 %208, %v69_v26  }
  0xa2   :  { %212 = vset.pattern.permute.xlu2 %v275_v27  ;;  %211 = vset.pattern.permute.xlu1 %v276_v28 }
  0xa3   :  { %213 = vset.pattern.permute.xlu0 %v277_v29  ;;  %116 = vperm.xlu2 %212, %v69_v26  }
  0xa4   :  { %105 = vperm.xlu1 %211, %v69_v26   ;;  %127 = vperm.xlu0 %213, %v69_v26  }
  0xab   :  { %215 = vset.pattern.permute.xlu2 %v278_v30 }
  0xac   :  { %214 = vset.pattern.permute.xlu1 %v279_v31  ;;  %149 = vperm.xlu2 %215, %v69_v26  }
  0xad   :  { %138 = vperm.xlu1 %214, %v69_v26   ;;  %216 = vset.pattern.permute.xlu0 %v278_v30 }
  0xf4   :  { %v95_v39 = vpop.permute.xlu2 %94 }
  0xf5   :  { %vm96_vm12 = vcmp.eq.s32.totalorder %v95_v39, %v295_v33  ;;  %vm97_vm14 = vcmp.eq.s32.totalorder %v95_v39, %v298_v34  ;;  %vm98_vm0 = vcmp.eq.s32.totalorder %v95_v39, %v301_v36 }
  0xfd   :  { %v117_v41 = vpop.permute.xlu2 %116 }
 0x106   :  { %v150_v44 = vpop.permute.xlu2 %149 }
 0x10c   :  { %v84_v35 = vpop.permute.xlu1 %83 }
 0x10d   :  { %vm85_vm1 = vcmp.eq.s32.totalorder %v84_v35, %v295_v33  ;;  %v77_v37 = vpop.permute.xlu0 %76  ;;  %vm86_vm2 = vcmp.eq.s32.totalorder %v84_v35, %v298_v34  ;;  %vm87_vm5 = vcmp.eq.s32.totalorder %v84_v35, %v301_v36  ;;  %vm88_vm7 = vcmp.eq.s32.totalorder %v84_v35, %v305_v38 }
 0x10e   :  { %vm78_vm3 = vcmp.eq.s32.totalorder %v77_v37, %v295_v33  ;;  %vm79_vm4 = vcmp.eq.s32.totalorder %v77_v37, %v298_v34  ;;  %vm80_vm6 = vcmp.eq.s32.totalorder %v77_v37, %v301_v36  ;;  %vm81_vm8 = vcmp.eq.s32.totalorder %v77_v37, %v305_v38 }
 0x10f   :  { %vm89_vm9 = vmor %vm78_vm3, %vm85_vm1  ;;  %vm99_vm3 = vcmp.eq.s32.totalorder %v95_v39, %v305_v38 }
 0x110   :  { %vm90_vm10 = vmor %vm79_vm4, %vm86_vm2 }
 0x111   :  { %vm91_vm11 = vmor %vm80_vm6, %vm87_vm5 }
 0x112   :  { %vm92_vm13 = vmor %vm81_vm8, %vm88_vm7 }
 0x113   :  { %vm100_vm15 = vmor %vm89_vm9, %vm96_vm12 }
 0x114   :  { %vm101_vm1 = vmor %vm90_vm10, %vm97_vm14  ;;  %vm118_vm14 = vcmp.eq.s32.totalorder %v117_v41, %v295_v33 }
 0x115   :  { %vm102_vm2 = vmor %vm91_vm11, %vm98_vm0  ;;  %vm119_vm11 = vcmp.eq.s32.totalorder %v117_v41, %v298_v34 }
 0x116   :  { %v106_v40 = vpop.permute.xlu1 %105  ;;  %vm103_vm7 = vmor %vm92_vm13, %vm99_vm3  ;;  %v128_v42 = vpop.permute.xlu0 %127  ;;  %vm120_vm13 = vcmp.eq.s32.totalorder %v117_v41, %v301_v36 }
 0x117   :  { %vm107_vm4 = vcmp.eq.s32.totalorder %v106_v40, %v295_v33  ;;  %vm108_vm5 = vcmp.eq.s32.totalorder %v106_v40, %v298_v34  ;;  %vm109_vm6 = vcmp.eq.s32.totalorder %v106_v40, %v301_v36  ;;  %vm110_vm8 = vcmp.eq.s32.totalorder %v106_v40, %v305_v38 }
 0x118   :  { %vm111_vm9 = vmor %vm100_vm15, %vm107_vm4  ;;  %vm121_vm15 = vcmp.eq.s32.totalorder %v117_v41, %v305_v38 }
 0x119   :  { %vm112_vm12 = vmor %vm101_vm1, %vm108_vm5 }
 0x11a   :  { %vm113_vm10 = vmor %vm102_vm2, %vm109_vm6  ;;  %vm129_vm2 = vcmp.eq.s32.totalorder %v128_v42, %v295_v33  ;;  %vm130_vm6 = vcmp.eq.s32.totalorder %v128_v42, %v298_v34 }
 0x11b   :  { %vm114_vm0 = vmor %vm103_vm7, %vm110_vm8  ;;  %vm131_vm8 = vcmp.eq.s32.totalorder %v128_v42, %v301_v36 }
 0x11c   :  { %vm122_vm3 = vmor %vm111_vm9, %vm118_vm14 }
 0x11d   :  { %vm123_vm4 = vmor %vm112_vm12, %vm119_vm11  ;;  %vm132_vm11 = vcmp.eq.s32.totalorder %v128_v42, %v305_v38 }
 0x11e   :  { %vm124_vm1 = vmor %vm113_vm10, %vm120_vm13 }
 0x11f   :  { %vm125_vm5 = vmor %vm114_vm0, %vm121_vm15  ;;  %v139_v43 = vpop.permute.xlu1 %138 }
 0x120   :  { %vm133_vm7 = vmor %vm122_vm3, %vm129_vm2  ;;  %vm140_vm14 = vcmp.eq.s32.totalorder %v139_v43, %v295_v33  ;;  %vm141_vm10 = vcmp.eq.s32.totalorder %v139_v43, %v298_v34  ;;  %vm142_vm0 = vcmp.eq.s32.totalorder %v139_v43, %v301_v36  ;;  %vm143_vm15 = vcmp.eq.s32.totalorder %v139_v43, %v305_v38 }
 0x121   :  { %vm134_vm9 = vmor %vm123_vm4, %vm130_vm6  ;;  %vm151_vm6 = vcmp.eq.s32.totalorder %v150_v44, %v295_v33 }
 0x122   :  { %vm135_vm12 = vmor %vm124_vm1, %vm131_vm8  ;;  %vm152_vm8 = vcmp.eq.s32.totalorder %v150_v44, %v298_v34 }
 0x123   :  { %vm136_vm13 = vmor %vm125_vm5, %vm132_vm11  ;;  %vm153_vm11 = vcmp.eq.s32.totalorder %v150_v44, %v301_v36 }
 0x124   :  { %vm144_vm2 = vmor %vm133_vm7, %vm140_vm14 }
 0x125   :  { %vm145_vm3 = vmor %vm134_vm9, %vm141_vm10  ;;  %vm154_vm9 = vcmp.eq.s32.totalorder %v150_v44, %v305_v38 }
 0x126   :  { %vm146_vm4 = vmor %vm135_vm12, %vm142_vm0 }
 0x127   :  { %vm147_vm1 = vmor %vm136_vm13, %vm143_vm15 }
 0x128   :  { %vm155_vm5 = vmor %vm144_vm2, %vm151_vm6 }
 0x129   :  { %vm156_vm7 = vmor %vm145_vm3, %vm152_vm8  ;;  %v189_v46 = vsel %vm155_vm5, 1.0, %v281_v45 }
 0x12a   :  { %vm157_vm14 = vmor %vm146_vm4, %vm153_vm11  ;;  %v190_v47 = vsel %vm156_vm7, 1.0, %v281_v45  ;;  %167 = vst [vmem:[#allocation5] sm:$0xff] %v189_v46 }
 0x12b   :  { %vm158_vm12 = vmor %vm147_vm1, %vm154_vm9  ;;  %v191_v48 = vsel %vm157_vm14, 1.0, %v281_v45  ;;  %168 = vst [vmem:[#allocation5 + $0x8] sm:$0xff] %v190_v47 }
 0x12c   :  { %v192_v49 = vsel %vm158_vm12, 1.0, %v281_v45  ;;  %169 = vst [vmem:[#allocation5 + $0x10] sm:$0xff] %v191_v48 }
 0x12d   :  { %170 = vst [vmem:[#allocation5 + $0x18] sm:$0xff] %v192_v49 }
 0x12e   :  { %181 = dma.vmem_to_hbm [thread:$0]  %s177_s13, 512, %s179_s16, [#allocation4]  }
 0x12f   :  { %267 = dma.done.wait [#allocation4], 512  }
 0x130   :  { %268 = vsyncadd [#allocation4], 4294966784 }
 0x131   :  { %186 = vsyncpa [#allocation3], 1 }
 0x132   :  { %187 = vsyncpa [#allocation4], 1 }

</bundles_post_ra>
